<compile_context>
chip_gen: v7x
topology: tpu7x:2x2x1
jax: 0.10.0
libtpu: 0.0.40
codegen_flags: <defaults>
</compile_context>

<pallas_src>
import functools

import jax
import jax.numpy as jnp
from jax.experimental import pallas as pl
from jax.experimental.pallas import tpu as pltpu

_N_MODELS = 9        # 8 students + mimic
_N_STUDENT = 8


def _threshold_kernel(tgt_ref, *refs, temperature, n_rows, ragged, reduce_dtype):
    """refs = (logits_0 .. logits_8, thr_out, max_out)."""
    model_refs = refs[:_N_MODELS]
    thr_ref = refs[_N_MODELS]
    max_ref = refs[_N_MODELS + 1]

    tgt = tgt_ref[...]                                       # (TN, 1) int32
    bn, c = model_refs[0].shape
    neg = jnp.asarray(jnp.finfo(reduce_dtype).min, reduce_dtype)
    inv_t = jnp.float32(1.0 / temperature)

    # Target mask built once from a lane iota (hoisted out of the model loop).
    col = jax.lax.broadcasted_iota(jnp.int32, (bn, c), 1)    # (TN, C)
    tmask = col == tgt                                       # (TN, C) bool

    if ragged:
        # Row-validity mask for the (only) ragged last block: garbage rows
        # must not contribute to the global student max.
        row = pl.program_id(0) * bn + jax.lax.broadcasted_iota(jnp.int32, (bn, 1), 0)
        valid = row < n_rows                                 # (TN, 1) bool
    else:
        valid = None

    margins = []                                             # 9 x (TN, 1) f32
    stud_max = None
    for m in range(_N_MODELS):
        x = model_refs[m][...]
        if x.dtype != reduce_dtype:
            x = x.astype(reduce_dtype)
        # 2-reduction formulation: value at the target, and the row max
        # excluding the target element.
        tgt_val = jnp.max(jnp.where(tmask, x, neg), axis=-1, keepdims=True)
        rest = jnp.max(jnp.where(tmask, neg, x), axis=-1, keepdims=True)
        tgt_f = tgt_val.astype(jnp.float32)
        rest_f = rest.astype(jnp.float32)
        # strict > : a tie at the max gives margin 0, matching the reference.
        hit = tgt_f > rest_f
        margins.append(jnp.where(hit, (tgt_f - rest_f) * inv_t, jnp.float32(0.0)))
        if m < _N_STUDENT:
            row_max = jnp.maximum(tgt_f, rest_f)             # full row max, free
            stud_max = row_max if stud_max is None else jnp.maximum(stud_max, row_max)

    if valid is not None:
        stud_max = jnp.where(valid, stud_max, -jnp.inf)      # drop ragged rows

    # (TN, 9) -> (9, TN): one small transpose so the output store is lane-dense.
    marg_t = jnp.transpose(jnp.concatenate(margins, axis=-1))    # (9, TN) f32

    # softmax over the model axis (1/T already folded into the margins)
    zmax = jnp.max(marg_t, axis=0, keepdims=True)            # (1, TN)
    e = jnp.exp(marg_t - zmax)
    denom = jnp.sum(e, axis=0, keepdims=True)                # (1, TN)
    r = pl.reciprocal(denom, approx=True)                    # EUP slot
    r = r * (jnp.float32(2.0) - denom * r)                   # Newton step -> ~f32 exact
    thr_ref[...] = e * r

    # per-tile global max over the 8 student models (mimic excluded)
    tile_max = jnp.max(stud_max)                             # scalar f32
    max_ref[...] = jnp.broadcast_to(tile_max, max_ref.shape)


def _round_up(x, m):
    return ((x + m - 1) // m) * m


def _vmem_capacity_bytes():
    try:
        cap = getattr(pltpu.get_tpu_info(), "vmem_capacity_bytes", None)
        if cap:
            return int(cap)
    except Exception:
        pass
    return 64 * 1024 * 1024          # conservative default: v7x per-TC VMEM


def _choose_tile_n(n_classes, itemsize, budget_bytes):
    """Rows per grid step; accounts for lane padding and in-kernel temporaries."""
    c_pad = _round_up(n_classes, 128)
    per_row = (
        2 * (_N_MODELS * c_pad * itemsize   # 9 logit slabs, double-buffered
             + 128 * 4                      # int32 target col occupies a full 128-lane row
             + 16 * 4)                      # (9->16 sublane, TN lane) f32 thr block
        + 4 * c_pad * 4                     # ~4 live (TN, c_pad) f32 temporaries
    )
    tn = budget_bytes // per_row
    tn = (tn // 128) * 128                  # multiple of 128 covers every dtype's sublane tile
    return int(max(128, min(8192, tn)))


def threshold_weights8(outputs, mimic, targets, n_test, temperature=2.0, tile_n=None):
    """outputs: list/tuple of 8 arrays [N, C]; mimic: [N, C]; targets: [N] int."""
    assert len(outputs) == _N_STUDENT
    logits = list(outputs) + [mimic]        # 9 x [N, C], kept UNSTACKED (no HBM copy)
    n, c = logits[0].shape
    dtype = logits[0].dtype
    itemsize = jnp.dtype(dtype).itemsize

    # generation-aware VMEM sizing: ~48 MiB limit on v7x, ~96 MiB on v5e/v6e;
    # working-set budget = half the physical per-core VMEM.
    vmem_phys = _vmem_capacity_bytes()
    vmem_limit = min(vmem_phys * 3 // 4, 96 * 1024 * 1024)
    budget = vmem_phys // 2

    tn = int(tile_n) if tile_n is not None else _choose_tile_n(c, itemsize, budget)
    if tn >= n:
        tn = n                               # single tile: block == full array dims (always legal)
    grid = pl.cdiv(n, tn)
    n_pad = grid * tn
    ragged = n_pad != n                      # last block partially out of bounds -> mask in-kernel

    # reduce natively in bf16/f32; anything else is upcast to f32 in-kernel
    if dtype == jnp.float32 or dtype == jnp.bfloat16:
        reduce_dtype = dtype
    else:
        reduce_dtype = jnp.float32

    tgt2d = targets.astype(jnp.int32).reshape(-1, 1)

    kernel = functools.partial(
        _threshold_kernel, temperature=float(temperature),
        n_rows=n, ragged=ragged, reduce_dtype=reduce_dtype)

    logit_spec = pl.BlockSpec((tn, c), lambda i: (i, 0))

    thr, maxes = pl.pallas_call(
        kernel,
        out_shape=(
            jax.ShapeDtypeStruct((_N_MODELS, n_pad), jnp.float32),   # thr, lane-dense
            jax.ShapeDtypeStruct((grid, 1, 128), jnp.float32),       # per-tile student max
        ),
        grid=(grid,),
        in_specs=[pl.BlockSpec((tn, 1), lambda i: (i, 0))] + [logit_spec] * _N_MODELS,
        out_specs=(
            pl.BlockSpec((_N_MODELS, tn), lambda i: (0, i)),
            pl.BlockSpec((1, 1, 128), lambda i: (i, 0, 0)),
        ),
        compiler_params=pltpu.CompilerParams(
            dimension_semantics=("parallel",),      # disjoint output blocks per tile -> safe
            vmem_limit_bytes=int(vmem_limit),
        ),
    )(tgt2d, *logits)

    max_preds = jnp.max(maxes)
    out_threshold = thr[:, :n_test].T            # [n_test, 9]
    return max_preds, out_threshold


def _reference(outputs, mimic, targets, n_test, temperature=2.0):
    # pure-JAX reference mirroring the PyTorch loop
    logits = jnp.stack(list(outputs) + [mimic], axis=0).astype(jnp.float32)  # [9, N, C]
    srt = jnp.sort(logits, axis=-1)[..., ::-1]                               # descending
    top1, top2 = srt[..., 0], srt[..., 1]                                    # [9, N]
    tgt_val = jnp.take_along_axis(
        logits,
        jnp.broadcast_to(targets[None, :, None], (_N_MODELS, logits.shape[1], 1)),
        axis=-1)[..., 0]                                                     # [9, N]
    margin = jnp.where(tgt_val == top1, top1 - top2, 0.0)                    # [9, N]
    sm = jax.nn.softmax(margin / temperature, axis=0)                        # [9, N]
    out_threshold = sm.T[:n_test]
    max_preds = jnp.max(jnp.stack(list(outputs), axis=0).astype(jnp.float32))
    return max_preds, out_threshold


if __name__ == "__main__":
    def run_case(case_key, n, c, dtype=jnp.float32, tile_n=None):
        keys = jax.random.split(case_key, 10)
        outputs = [jax.random.normal(keys[i], (n, c), dtype=jnp.float32).astype(dtype)
                   for i in range(8)]
        mimic = jax.random.normal(keys[8], (n, c), dtype=jnp.float32).astype(dtype)
        targets = jax.random.randint(keys[9], (n,), 0, c, dtype=jnp.int32)
        n_test = n

        max_preds, out_threshold = threshold_weights8(
            outputs, mimic, targets, n_test, temperature=2.0, tile_n=tile_n)
        max_preds = jax.block_until_ready(max_preds)
        out_threshold = jax.block_until_ready(out_threshold)

        ref_max, ref_thr = _reference(outputs, mimic, targets, n_test, temperature=2.0)
        assert out_threshold.shape == (n_test, _N_MODELS)
        assert jnp.allclose(max_preds, ref_max, atol=1e-6), (float(max_preds), float(ref_max))
        # 1e-4 tolerance accounts for the EUP approx reciprocal (+ Newton refinement)
        assert jnp.allclose(out_threshold, ref_thr, atol=1e-4, rtol=1e-4), \
            float(jnp.max(jnp.abs(out_threshold - ref_thr)))

    key = jax.random.PRNGKey(0)
    k1, k2, k3, k4 = jax.random.split(key, 4)
    run_case(k1, n=8, c=16)                              # single tile
    run_case(k2, n=13, c=10)                             # odd single-tile shape (block == full dims)
    run_case(k3, n=300, c=16, tile_n=128)                # ragged multi-tile: in-kernel row mask, no padding copies
    run_case(k4, n=16, c=32, dtype=jnp.bfloat16)         # native bf16 reduction path
    print("KERNEL_OK")
</pallas_src>

<mosaic_0001>
module attributes {stable_mosaic.version = 11 : i64} {
  func.func @_threshold_kernel(%arg0: i32, %arg1: memref<8x1xi32, #tpu.memory_space<vmem>>, %arg2: memref<8x16xf32, #tpu.memory_space<vmem>>, %arg3: memref<8x16xf32, #tpu.memory_space<vmem>>, %arg4: memref<8x16xf32, #tpu.memory_space<vmem>>, %arg5: memref<8x16xf32, #tpu.memory_space<vmem>>, %arg6: memref<8x16xf32, #tpu.memory_space<vmem>>, %arg7: memref<8x16xf32, #tpu.memory_space<vmem>>, %arg8: memref<8x16xf32, #tpu.memory_space<vmem>>, %arg9: memref<8x16xf32, #tpu.memory_space<vmem>>, %arg10: memref<8x16xf32, #tpu.memory_space<vmem>>, %arg11: memref<9x8xf32, #tpu.memory_space<vmem>>, %arg12: memref<1x1x128xf32, #tpu.memory_space<vmem>>) attributes {dimension_semantics = [#tpu.dimension_semantics<parallel>], iteration_bounds = array<i64: 1>, scalar_prefetch = 0 : i64, scratch_operands = 0 : i64, tpu.core_type = #tpu.core_type<tc>, window_params = [{transform_indices = @transform_0, window_bounds = array<i64: 8, 1>}, {transform_indices = @transform_1, window_bounds = array<i64: 8, 16>}, {transform_indices = @transform_2, window_bounds = array<i64: 8, 16>}, {transform_indices = @transform_3, window_bounds = array<i64: 8, 16>}, {transform_indices = @transform_4, window_bounds = array<i64: 8, 16>}, {transform_indices = @transform_5, window_bounds = array<i64: 8, 16>}, {transform_indices = @transform_6, window_bounds = array<i64: 8, 16>}, {transform_indices = @transform_7, window_bounds = array<i64: 8, 16>}, {transform_indices = @transform_8, window_bounds = array<i64: 8, 16>}, {transform_indices = @transform_9, window_bounds = array<i64: 8, 16>}, {transform_indices = @transform_10, window_bounds = array<i64: 9, 8>}, {transform_indices = @transform_11, window_bounds = array<i64: 1, 1, 128>}]} {
    %c0 = arith.constant 0 : index
    %c0_0 = arith.constant 0 : index
    %0 = vector.load %arg1[%c0, %c0_0] : memref<8x1xi32, #tpu.memory_space<vmem>>, vector<8x1xi32>
    %1 = tpu.iota {dimensions = array<i32: 1>} : vector<8x16xi32>
    %2 = vector.broadcast %0 : vector<8x1xi32> to vector<8x16xi32>
    %3 = arith.cmpi eq, %1, %2 : vector<8x16xi32>
    %c0_1 = arith.constant 0 : index
    %c0_2 = arith.constant 0 : index
    %4 = vector.load %arg2[%c0_1, %c0_2] : memref<8x16xf32, #tpu.memory_space<vmem>>, vector<8x16xf32>
    %cst = arith.constant -3.40282347E+38 : f32
    %5 = vector.broadcast %cst : f32 to vector<8x16xf32>
    %6 = arith.select %3, %4, %5 : vector<8x16xi1>, vector<8x16xf32>
    %cst_3 = arith.constant dense<0xFF800000> : vector<8xf32>
    %7 = vector.multi_reduction <maximumf>, %6, %cst_3 [1] : vector<8x16xf32> to vector<8xf32>
    %8 = vector.shape_cast %7 : vector<8xf32> to vector<8x1xf32>
    %cst_4 = arith.constant -3.40282347E+38 : f32
    %9 = vector.broadcast %cst_4 : f32 to vector<8x16xf32>
    %10 = arith.select %3, %9, %4 : vector<8x16xi1>, vector<8x16xf32>
    %cst_5 = arith.constant dense<0xFF800000> : vector<8xf32>
    %11 = vector.multi_reduction <maximumf>, %10, %cst_5 [1] : vector<8x16xf32> to vector<8xf32>
    %12 = vector.shape_cast %11 : vector<8xf32> to vector<8x1xf32>
    %13 = arith.cmpf ogt, %8, %12 : vector<8x1xf32>
    %14 = arith.subf %8, %12 : vector<8x1xf32>
    %cst_6 = arith.constant 5.000000e-01 : f32
    %15 = vector.broadcast %cst_6 : f32 to vector<8x1xf32>
    %16 = arith.mulf %14, %15 : vector<8x1xf32>
    %cst_7 = arith.constant 0.000000e+00 : f32
    %17 = vector.broadcast %cst_7 : f32 to vector<8x1xf32>
    %18 = arith.select %13, %16, %17 : vector<8x1xi1>, vector<8x1xf32>
    %19 = arith.maximumf %8, %12 : vector<8x1xf32>
    %c0_8 = arith.constant 0 : index
    %c0_9 = arith.constant 0 : index
    %20 = vector.load %arg3[%c0_8, %c0_9] : memref<8x16xf32, #tpu.memory_space<vmem>>, vector<8x16xf32>
    %cst_10 = arith.constant -3.40282347E+38 : f32
    %21 = vector.broadcast %cst_10 : f32 to vector<8x16xf32>
    %22 = arith.select %3, %20, %21 : vector<8x16xi1>, vector<8x16xf32>
    %cst_11 = arith.constant dense<0xFF800000> : vector<8xf32>
    %23 = vector.multi_reduction <maximumf>, %22, %cst_11 [1] : vector<8x16xf32> to vector<8xf32>
    %24 = vector.shape_cast %23 : vector<8xf32> to vector<8x1xf32>
    %cst_12 = arith.constant -3.40282347E+38 : f32
    %25 = vector.broadcast %cst_12 : f32 to vector<8x16xf32>
    %26 = arith.select %3, %25, %20 : vector<8x16xi1>, vector<8x16xf32>
    %cst_13 = arith.constant dense<0xFF800000> : vector<8xf32>
    %27 = vector.multi_reduction <maximumf>, %26, %cst_13 [1] : vector<8x16xf32> to vector<8xf32>
    %28 = vector.shape_cast %27 : vector<8xf32> to vector<8x1xf32>
    %29 = arith.cmpf ogt, %24, %28 : vector<8x1xf32>
    %30 = arith.subf %24, %28 : vector<8x1xf32>
    %cst_14 = arith.constant 5.000000e-01 : f32
    %31 = vector.broadcast %cst_14 : f32 to vector<8x1xf32>
    %32 = arith.mulf %30, %31 : vector<8x1xf32>
    %cst_15 = arith.constant 0.000000e+00 : f32
    %33 = vector.broadcast %cst_15 : f32 to vector<8x1xf32>
    %34 = arith.select %29, %32, %33 : vector<8x1xi1>, vector<8x1xf32>
    %35 = arith.maximumf %24, %28 : vector<8x1xf32>
    %36 = arith.maximumf %19, %35 : vector<8x1xf32>
    %c0_16 = arith.constant 0 : index
    %c0_17 = arith.constant 0 : index
    %37 = vector.load %arg4[%c0_16, %c0_17] : memref<8x16xf32, #tpu.memory_space<vmem>>, vector<8x16xf32>
    %cst_18 = arith.constant -3.40282347E+38 : f32
    %38 = vector.broadcast %cst_18 : f32 to vector<8x16xf32>
    %39 = arith.select %3, %37, %38 : vector<8x16xi1>, vector<8x16xf32>
    %cst_19 = arith.constant dense<0xFF800000> : vector<8xf32>
    %40 = vector.multi_reduction <maximumf>, %39, %cst_19 [1] : vector<8x16xf32> to vector<8xf32>
    %41 = vector.shape_cast %40 : vector<8xf32> to vector<8x1xf32>
    %cst_20 = arith.constant -3.40282347E+38 : f32
    %42 = vector.broadcast %cst_20 : f32 to vector<8x16xf32>
    %43 = arith.select %3, %42, %37 : vector<8x16xi1>, vector<8x16xf32>
    %cst_21 = arith.constant dense<0xFF800000> : vector<8xf32>
    %44 = vector.multi_reduction <maximumf>, %43, %cst_21 [1] : vector<8x16xf32> to vector<8xf32>
    %45 = vector.shape_cast %44 : vector<8xf32> to vector<8x1xf32>
    %46 = arith.cmpf ogt, %41, %45 : vector<8x1xf32>
    %47 = arith.subf %41, %45 : vector<8x1xf32>
    %cst_22 = arith.constant 5.000000e-01 : f32
    %48 = vector.broadcast %cst_22 : f32 to vector<8x1xf32>
    %49 = arith.mulf %47, %48 : vector<8x1xf32>
    %cst_23 = arith.constant 0.000000e+00 : f32
    %50 = vector.broadcast %cst_23 : f32 to vector<8x1xf32>
    %51 = arith.select %46, %49, %50 : vector<8x1xi1>, vector<8x1xf32>
    %52 = arith.maximumf %41, %45 : vector<8x1xf32>
    %53 = arith.maximumf %36, %52 : vector<8x1xf32>
    %c0_24 = arith.constant 0 : index
    %c0_25 = arith.constant 0 : index
    %54 = vector.load %arg5[%c0_24, %c0_25] : memref<8x16xf32, #tpu.memory_space<vmem>>, vector<8x16xf32>
    %cst_26 = arith.constant -3.40282347E+38 : f32
    %55 = vector.broadcast %cst_26 : f32 to vector<8x16xf32>
    %56 = arith.select %3, %54, %55 : vector<8x16xi1>, vector<8x16xf32>
    %cst_27 = arith.constant dense<0xFF800000> : vector<8xf32>
    %57 = vector.multi_reduction <maximumf>, %56, %cst_27 [1] : vector<8x16xf32> to vector<8xf32>
    %58 = vector.shape_cast %57 : vector<8xf32> to vector<8x1xf32>
    %cst_28 = arith.constant -3.40282347E+38 : f32
    %59 = vector.broadcast %cst_28 : f32 to vector<8x16xf32>
    %60 = arith.select %3, %59, %54 : vector<8x16xi1>, vector<8x16xf32>
    %cst_29 = arith.constant dense<0xFF800000> : vector<8xf32>
    %61 = vector.multi_reduction <maximumf>, %60, %cst_29 [1] : vector<8x16xf32> to vector<8xf32>
    %62 = vector.shape_cast %61 : vector<8xf32> to vector<8x1xf32>
    %63 = arith.cmpf ogt, %58, %62 : vector<8x1xf32>
    %64 = arith.subf %58, %62 : vector<8x1xf32>
    %cst_30 = arith.constant 5.000000e-01 : f32
    %65 = vector.broadcast %cst_30 : f32 to vector<8x1xf32>
    %66 = arith.mulf %64, %65 : vector<8x1xf32>
    %cst_31 = arith.constant 0.000000e+00 : f32
    %67 = vector.broadcast %cst_31 : f32 to vector<8x1xf32>
    %68 = arith.select %63, %66, %67 : vector<8x1xi1>, vector<8x1xf32>
    %69 = arith.maximumf %58, %62 : vector<8x1xf32>
    %70 = arith.maximumf %53, %69 : vector<8x1xf32>
    %c0_32 = arith.constant 0 : index
    %c0_33 = arith.constant 0 : index
    %71 = vector.load %arg6[%c0_32, %c0_33] : memref<8x16xf32, #tpu.memory_space<vmem>>, vector<8x16xf32>
    %cst_34 = arith.constant -3.40282347E+38 : f32
    %72 = vector.broadcast %cst_34 : f32 to vector<8x16xf32>
    %73 = arith.select %3, %71, %72 : vector<8x16xi1>, vector<8x16xf32>
    %cst_35 = arith.constant dense<0xFF800000> : vector<8xf32>
    %74 = vector.multi_reduction <maximumf>, %73, %cst_35 [1] : vector<8x16xf32> to vector<8xf32>
    %75 = vector.shape_cast %74 : vector<8xf32> to vector<8x1xf32>
    %cst_36 = arith.constant -3.40282347E+38 : f32
    %76 = vector.broadcast %cst_36 : f32 to vector<8x16xf32>
    %77 = arith.select %3, %76, %71 : vector<8x16xi1>, vector<8x16xf32>
    %cst_37 = arith.constant dense<0xFF800000> : vector<8xf32>
    %78 = vector.multi_reduction <maximumf>, %77, %cst_37 [1] : vector<8x16xf32> to vector<8xf32>
    %79 = vector.shape_cast %78 : vector<8xf32> to vector<8x1xf32>
    %80 = arith.cmpf ogt, %75, %79 : vector<8x1xf32>
    %81 = arith.subf %75, %79 : vector<8x1xf32>
    %cst_38 = arith.constant 5.000000e-01 : f32
    %82 = vector.broadcast %cst_38 : f32 to vector<8x1xf32>
    %83 = arith.mulf %81, %82 : vector<8x1xf32>
    %cst_39 = arith.constant 0.000000e+00 : f32
    %84 = vector.broadcast %cst_39 : f32 to vector<8x1xf32>
    %85 = arith.select %80, %83, %84 : vector<8x1xi1>, vector<8x1xf32>
    %86 = arith.maximumf %75, %79 : vector<8x1xf32>
    %87 = arith.maximumf %70, %86 : vector<8x1xf32>
    %c0_40 = arith.constant 0 : index
    %c0_41 = arith.constant 0 : index
    %88 = vector.load %arg7[%c0_40, %c0_41] : memref<8x16xf32, #tpu.memory_space<vmem>>, vector<8x16xf32>
    %cst_42 = arith.constant -3.40282347E+38 : f32
    %89 = vector.broadcast %cst_42 : f32 to vector<8x16xf32>
    %90 = arith.select %3, %88, %89 : vector<8x16xi1>, vector<8x16xf32>
    %cst_43 = arith.constant dense<0xFF800000> : vector<8xf32>
    %91 = vector.multi_reduction <maximumf>, %90, %cst_43 [1] : vector<8x16xf32> to vector<8xf32>
    %92 = vector.shape_cast %91 : vector<8xf32> to vector<8x1xf32>
    %cst_44 = arith.constant -3.40282347E+38 : f32
    %93 = vector.broadcast %cst_44 : f32 to vector<8x16xf32>
    %94 = arith.select %3, %93, %88 : vector<8x16xi1>, vector<8x16xf32>
    %cst_45 = arith.constant dense<0xFF800000> : vector<8xf32>
    %95 = vector.multi_reduction <maximumf>, %94, %cst_45 [1] : vector<8x16xf32> to vector<8xf32>
    %96 = vector.shape_cast %95 : vector<8xf32> to vector<8x1xf32>
    %97 = arith.cmpf ogt, %92, %96 : vector<8x1xf32>
    %98 = arith.subf %92, %96 : vector<8x1xf32>
    %cst_46 = arith.constant 5.000000e-01 : f32
    %99 = vector.broadcast %cst_46 : f32 to vector<8x1xf32>
    %100 = arith.mulf %98, %99 : vector<8x1xf32>
    %cst_47 = arith.constant 0.000000e+00 : f32
    %101 = vector.broadcast %cst_47 : f32 to vector<8x1xf32>
    %102 = arith.select %97, %100, %101 : vector<8x1xi1>, vector<8x1xf32>
    %103 = arith.maximumf %92, %96 : vector<8x1xf32>
    %104 = arith.maximumf %87, %103 : vector<8x1xf32>
    %c0_48 = arith.constant 0 : index
    %c0_49 = arith.constant 0 : index
    %105 = vector.load %arg8[%c0_48, %c0_49] : memref<8x16xf32, #tpu.memory_space<vmem>>, vector<8x16xf32>
    %cst_50 = arith.constant -3.40282347E+38 : f32
    %106 = vector.broadcast %cst_50 : f32 to vector<8x16xf32>
    %107 = arith.select %3, %105, %106 : vector<8x16xi1>, vector<8x16xf32>
    %cst_51 = arith.constant dense<0xFF800000> : vector<8xf32>
    %108 = vector.multi_reduction <maximumf>, %107, %cst_51 [1] : vector<8x16xf32> to vector<8xf32>
    %109 = vector.shape_cast %108 : vector<8xf32> to vector<8x1xf32>
    %cst_52 = arith.constant -3.40282347E+38 : f32
    %110 = vector.broadcast %cst_52 : f32 to vector<8x16xf32>
    %111 = arith.select %3, %110, %105 : vector<8x16xi1>, vector<8x16xf32>
    %cst_53 = arith.constant dense<0xFF800000> : vector<8xf32>
    %112 = vector.multi_reduction <maximumf>, %111, %cst_53 [1] : vector<8x16xf32> to vector<8xf32>
    %113 = vector.shape_cast %112 : vector<8xf32> to vector<8x1xf32>
    %114 = arith.cmpf ogt, %109, %113 : vector<8x1xf32>
    %115 = arith.subf %109, %113 : vector<8x1xf32>
    %cst_54 = arith.constant 5.000000e-01 : f32
    %116 = vector.broadcast %cst_54 : f32 to vector<8x1xf32>
    %117 = arith.mulf %115, %116 : vector<8x1xf32>
    %cst_55 = arith.constant 0.000000e+00 : f32
    %118 = vector.broadcast %cst_55 : f32 to vector<8x1xf32>
    %119 = arith.select %114, %117, %118 : vector<8x1xi1>, vector<8x1xf32>
    %120 = arith.maximumf %109, %113 : vector<8x1xf32>
    %121 = arith.maximumf %104, %120 : vector<8x1xf32>
    %c0_56 = arith.constant 0 : index
    %c0_57 = arith.constant 0 : index
    %122 = vector.load %arg9[%c0_56, %c0_57] : memref<8x16xf32, #tpu.memory_space<vmem>>, vector<8x16xf32>
    %cst_58 = arith.constant -3.40282347E+38 : f32
    %123 = vector.broadcast %cst_58 : f32 to vector<8x16xf32>
    %124 = arith.select %3, %122, %123 : vector<8x16xi1>, vector<8x16xf32>
    %cst_59 = arith.constant dense<0xFF800000> : vector<8xf32>
    %125 = vector.multi_reduction <maximumf>, %124, %cst_59 [1] : vector<8x16xf32> to vector<8xf32>
    %126 = vector.shape_cast %125 : vector<8xf32> to vector<8x1xf32>
    %cst_60 = arith.constant -3.40282347E+38 : f32
    %127 = vector.broadcast %cst_60 : f32 to vector<8x16xf32>
    %128 = arith.select %3, %127, %122 : vector<8x16xi1>, vector<8x16xf32>
    %cst_61 = arith.constant dense<0xFF800000> : vector<8xf32>
    %129 = vector.multi_reduction <maximumf>, %128, %cst_61 [1] : vector<8x16xf32> to vector<8xf32>
    %130 = vector.shape_cast %129 : vector<8xf32> to vector<8x1xf32>
    %131 = arith.cmpf ogt, %126, %130 : vector<8x1xf32>
    %132 = arith.subf %126, %130 : vector<8x1xf32>
    %cst_62 = arith.constant 5.000000e-01 : f32
    %133 = vector.broadcast %cst_62 : f32 to vector<8x1xf32>
    %134 = arith.mulf %132, %133 : vector<8x1xf32>
    %cst_63 = arith.constant 0.000000e+00 : f32
    %135 = vector.broadcast %cst_63 : f32 to vector<8x1xf32>
    %136 = arith.select %131, %134, %135 : vector<8x1xi1>, vector<8x1xf32>
    %137 = arith.maximumf %126, %130 : vector<8x1xf32>
    %138 = arith.maximumf %121, %137 : vector<8x1xf32>
    %c0_64 = arith.constant 0 : index
    %c0_65 = arith.constant 0 : index
    %139 = vector.load %arg10[%c0_64, %c0_65] : memref<8x16xf32, #tpu.memory_space<vmem>>, vector<8x16xf32>
    %cst_66 = arith.constant -3.40282347E+38 : f32
    %140 = vector.broadcast %cst_66 : f32 to vector<8x16xf32>
    %141 = arith.select %3, %139, %140 : vector<8x16xi1>, vector<8x16xf32>
    %cst_67 = arith.constant dense<0xFF800000> : vector<8xf32>
    %142 = vector.multi_reduction <maximumf>, %141, %cst_67 [1] : vector<8x16xf32> to vector<8xf32>
    %143 = vector.shape_cast %142 : vector<8xf32> to vector<8x1xf32>
    %cst_68 = arith.constant -3.40282347E+38 : f32
    %144 = vector.broadcast %cst_68 : f32 to vector<8x16xf32>
    %145 = arith.select %3, %144, %139 : vector<8x16xi1>, vector<8x16xf32>
    %cst_69 = arith.constant dense<0xFF800000> : vector<8xf32>
    %146 = vector.multi_reduction <maximumf>, %145, %cst_69 [1] : vector<8x16xf32> to vector<8xf32>
    %147 = vector.shape_cast %146 : vector<8xf32> to vector<8x1xf32>
    %148 = arith.cmpf ogt, %143, %147 : vector<8x1xf32>
    %149 = arith.subf %143, %147 : vector<8x1xf32>
    %cst_70 = arith.constant 5.000000e-01 : f32
    %150 = vector.broadcast %cst_70 : f32 to vector<8x1xf32>
    %151 = arith.mulf %149, %150 : vector<8x1xf32>
    %cst_71 = arith.constant 0.000000e+00 : f32
    %152 = vector.broadcast %cst_71 : f32 to vector<8x1xf32>
    %153 = arith.select %148, %151, %152 : vector<8x1xi1>, vector<8x1xf32>
    %154 = tpu.concatenate %18, %34, %51, %68, %85, %102, %119, %136, %153 in 1 : vector<8x1xf32>, vector<8x1xf32>, vector<8x1xf32>, vector<8x1xf32>, vector<8x1xf32>, vector<8x1xf32>, vector<8x1xf32>, vector<8x1xf32>, vector<8x1xf32> -> vector<8x9xf32>
    %155 = tpu.transpose %154, [1, 0] : vector<8x9xf32> -> vector<9x8xf32>
    %cst_72 = arith.constant dense<0xFF800000> : vector<8xf32>
    %156 = vector.multi_reduction <maximumf>, %155, %cst_72 [0] : vector<9x8xf32> to vector<8xf32>
    %157 = vector.shape_cast %156 : vector<8xf32> to vector<1x8xf32>
    %158 = vector.broadcast %157 : vector<1x8xf32> to vector<9x8xf32>
    %159 = arith.subf %155, %158 : vector<9x8xf32>
    %160 = math.exp %159 : vector<9x8xf32>
    %cst_73 = arith.constant dense<0.000000e+00> : vector<8xf32>
    %161 = vector.multi_reduction <add>, %160, %cst_73 [0] : vector<9x8xf32> to vector<8xf32>
    %162 = vector.shape_cast %161 : vector<8xf32> to vector<1x8xf32>
    %163 = tpu.reciprocal %162 {approx = true} : vector<1x8xf32> -> vector<1x8xf32>
    %164 = arith.mulf %162, %163 : vector<1x8xf32>
    %cst_74 = arith.constant 2.000000e+00 : f32
    %165 = vector.broadcast %cst_74 : f32 to vector<1x8xf32>
    %166 = arith.subf %165, %164 : vector<1x8xf32>
    %167 = arith.mulf %163, %166 : vector<1x8xf32>
    %168 = vector.broadcast %167 : vector<1x8xf32> to vector<9x8xf32>
    %169 = arith.mulf %160, %168 : vector<9x8xf32>
    %c0_75 = arith.constant 0 : index
    %c0_76 = arith.constant 0 : index
    %170 = vector.load %arg11[%c0_75, %c0_76] : memref<9x8xf32, #tpu.memory_space<vmem>>, vector<9x8xf32>
    tpu.vector_store %arg11[%c0_75, %c0_76], %169 {strides = array<i32>} : memref<9x8xf32, #tpu.memory_space<vmem>>, vector<9x8xf32>,
    %171 = vector.shape_cast %138 : vector<8x1xf32> to vector<1x8x1xf32>
    %cst_77 = arith.constant dense<0xFF800000> : vector<1xf32>
    %172 = vector.multi_reduction <maximumf>, %171, %cst_77 [1, 2] : vector<1x8x1xf32> to vector<1xf32>
    %173 = vector.shape_cast %172 : vector<1xf32> to vector<1x1x1xf32>
    %174 = vector.extract %173[0, 0, 0] : f32 from vector<1x1x1xf32>
    %175 = vector.broadcast %174 : f32 to vector<1x1x128xf32>
    %c0_78 = arith.constant 0 : index
    %c0_79 = arith.constant 0 : index
    %c0_80 = arith.constant 0 : index
    %176 = vector.load %arg12[%c0_78, %c0_79, %c0_80] : memref<1x1x128xf32, #tpu.memory_space<vmem>>, vector<1x1x128xf32>
    tpu.vector_store %arg12[%c0_78, %c0_79, %c0_80], %175 {strides = array<i32>} : memref<1x1x128xf32, #tpu.memory_space<vmem>>, vector<1x1x128xf32>,
    return
  }
  func.func @transform_0(%arg0: i32) -> (i32, i32) {
    %c0_i32 = arith.constant 0 : i32
    %c0_i32_0 = arith.constant 0 : i32
    return %arg0, %c0_i32 : i32, i32
  }
  func.func @transform_1(%arg0: i32) -> (i32, i32) {
    %c0_i32 = arith.constant 0 : i32
    %c0_i32_0 = arith.constant 0 : i32
    return %arg0, %c0_i32 : i32, i32
  }
  func.func @transform_2(%arg0: i32) -> (i32, i32) {
    %c0_i32 = arith.constant 0 : i32
    %c0_i32_0 = arith.constant 0 : i32
    return %arg0, %c0_i32 : i32, i32
  }
  func.func @transform_3(%arg0: i32) -> (i32, i32) {
    %c0_i32 = arith.constant 0 : i32
    %c0_i32_0 = arith.constant 0 : i32
    return %arg0, %c0_i32 : i32, i32
  }
  func.func @transform_4(%arg0: i32) -> (i32, i32) {
    %c0_i32 = arith.constant 0 : i32
    %c0_i32_0 = arith.constant 0 : i32
    return %arg0, %c0_i32 : i32, i32
  }
  func.func @transform_5(%arg0: i32) -> (i32, i32) {
    %c0_i32 = arith.constant 0 : i32
    %c0_i32_0 = arith.constant 0 : i32
    return %arg0, %c0_i32 : i32, i32
  }
  func.func @transform_6(%arg0: i32) -> (i32, i32) {
    %c0_i32 = arith.constant 0 : i32
    %c0_i32_0 = arith.constant 0 : i32
    return %arg0, %c0_i32 : i32, i32
  }
  func.func @transform_7(%arg0: i32) -> (i32, i32) {
    %c0_i32 = arith.constant 0 : i32
    %c0_i32_0 = arith.constant 0 : i32
    return %arg0, %c0_i32 : i32, i32
  }
  func.func @transform_8(%arg0: i32) -> (i32, i32) {
    %c0_i32 = arith.constant 0 : i32
    %c0_i32_0 = arith.constant 0 : i32
    return %arg0, %c0_i32 : i32, i32
  }
  func.func @transform_9(%arg0: i32) -> (i32, i32) {
    %c0_i32 = arith.constant 0 : i32
    %c0_i32_0 = arith.constant 0 : i32
    return %arg0, %c0_i32 : i32, i32
  }
  func.func @transform_10(%arg0: i32) -> (i32, i32) {
    %c0_i32 = arith.constant 0 : i32
    %c0_i32_0 = arith.constant 0 : i32
    return %c0_i32, %arg0 : i32, i32
  }
  func.func @transform_11(%arg0: i32) -> (i32, i32, i32) {
    %c0_i32 = arith.constant 0 : i32
    %c0_i32_0 = arith.constant 0 : i32
    %c0_i32_1 = arith.constant 0 : i32
    return %arg0, %c0_i32, %c0_i32_0 : i32, i32, i32
  }
}

</mosaic_0001>

<bundles_post_ra>
// kernel: tpu_custom_call.1
= control target key start
LH: loop header
LB: loop body
LE: loop exit
PB: predicated region body
PF: predicated region fallthrough
CT: control target
= control target key end

     0   :  { %17 = vsyncpa [#allocation3], 0  ;;  %s689_s0 = inlined_call_operand.vmem [shape: s32[8,1], index: 0, kind: input, shape index: {}]   ;;  %s690_s1 = inlined_call_operand.vmem [shape: f32[8,16], index: 1, kind: input, shape index: {}]   ;;  %s691_s2 = inlined_call_operand.vmem [shape: f32[8,16], index: 2, kind: input, shape index: {}]   ;;  %s692_s3 = inlined_call_operand.hbm [shape: f32[8,16], index: 3, kind: input, shape index: {}]   ;;  %s693_s4 = inlined_call_operand.vmem [shape: f32[8,16], index: 4, kind: input, shape index: {}]   ;;  %s694_s5 = inlined_call_operand.hbm [shape: f32[8,16], index: 5, kind: input, shape index: {}]   ;;  %s695_s6 = inlined_call_operand.hbm [shape: f32[8,16], index: 6, kind: input, shape index: {}]   ;;  %s696_s7 = inlined_call_operand.vmem [shape: f32[8,16], index: 7, kind: input, shape index: {}]   ;;  %s697_s8 = inlined_call_operand.hbm [shape: f32[8,16], index: 8, kind: input, shape index: {}]   ;;  %s698_s9 = inlined_call_operand.vmem [shape: f32[8,16], index: 9, kind: input, shape index: {}]   ;;  %s699_s10 = inlined_call_operand.vmem [shape: f32[9,8], index: 10, kind: output, shape index: {0}]   ;;  %s700_s11 = inlined_call_operand.hbm [shape: f32[1,1,128], index: 11, kind: output, shape index: {1}]  }
   0x1   :  { %18 = vsyncpa [#allocation6], 0 }
   0x2   :  { %19 = vsyncpa [#allocation9], 0 }
   0x3   :  { %20 = vsyncpa [#allocation4], 0  ;;  %s470_s17 = smov [#allocation5]   ;;  %s471_s19 = smov [#allocation2]  }
   0x4   :  { %s45_s18 = sshll.u32 %s470_s17, 4  ;;  %s33_s20 = sshll.u32 %s471_s19, 4  ;;  %s46_s18 = int_to_ptr.vmem [resolvable:$true] %s45_s18  ;;  %s34_s20 = int_to_ptr.vmem [resolvable:$true] %s33_s20 }
   0x5   :  { %s352_s23 = scalar_lea.hbm %s694_s5, 128 }
   0x6   :  { %p353_p0 = scmp.ne.s32.totalorder %s694_s5, %s352_s23  ;;  %p356_p1 = scmp.lt.u32.totalorder %s352_s23, %s694_s5 }
   0x8   :  { %p358_p2 = pnand %p356_p1, %p353_p0 }
   0xa   :  { %361 = shalt.err (!%p358_p2)
}
   0xb   :  { %s362_s28 = scalar_lea.vmem %s46_s18, 128  ;;  %p367_p4 = scmp.lt.s32.totalorder %s46_s18, %s46_s18 }
   0xc   :  { %p363_p3 = scmp.ne.s32.totalorder %s46_s18, %s362_s28  ;;  %p368_p5 = scmp.lt.s32.totalorder %s362_s28, %s362_s28 }
   0xe   :  { %p369_p6 = por %p368_p5, %p367_p4 }
  0x10   :  { %p370_p7 = pnand %p369_p6, %p363_p3 }
  0x12   :  { %373 = shalt.err (!%p370_p7)
}
  0x13   :  { %48 = dma.hbm_to_vmem [thread:$0]  %s694_s5, 128, %s46_s18, [#allocation6]  }
  0x14   :  { %s374_s14 = scalar_lea.hbm %s692_s3, 128 }
  0x15   :  { %p375_p8 = scmp.ne.s32.totalorder %s692_s3, %s374_s14  ;;  %p378_p9 = scmp.lt.u32.totalorder %s374_s14, %s692_s3 }
  0x17   :  { %p380_p10 = pnand %p378_p9, %p375_p8 }
  0x19   :  { %383 = shalt.err (!%p380_p10)
}
  0x1a   :  { %s384_s21 = scalar_lea.vmem %s34_s20, 128  ;;  %p389_p12 = scmp.lt.s32.totalorder %s34_s20, %s34_s20 }
  0x1b   :  { %p385_p11 = scmp.ne.s32.totalorder %s34_s20, %s384_s21  ;;  %p390_p13 = scmp.lt.s32.totalorder %s384_s21, %s384_s21 }
  0x1d   :  { %p391_p0 = por %p390_p13, %p389_p12 }
  0x1f   :  { %p392_p1 = pnand %p391_p0, %p385_p11 }
  0x21   :  { %395 = shalt.err (!%p392_p1)
}
  0x22   :  { %36 = dma.hbm_to_vmem [thread:$0]  %s692_s3, 128, %s34_s20, [#allocation3]  }
  0x23   :  { %s472_s22 = smov [#allocation7]   ;;  %s473_s24 = smov [#allocation8]  }
  0x24   :  { %s55_s23 = sshll.u32 %s472_s22, 4  ;;  %s67_s25 = sshll.u32 %s473_s24, 4  ;;  %s56_s23 = int_to_ptr.vmem [resolvable:$true] %s55_s23  ;;  %s68_s25 = int_to_ptr.vmem [resolvable:$true] %s67_s25 }
  0x25   :  { %s396_s28 = scalar_lea.hbm %s695_s6, 128 }
  0x26   :  { %p397_p2 = scmp.ne.s32.totalorder %s695_s6, %s396_s28  ;;  %p400_p3 = scmp.lt.u32.totalorder %s396_s28, %s695_s6 }
  0x28   :  { %p402_p4 = pnand %p400_p3, %p397_p2 }
  0x2a   :  { %405 = shalt.err (!%p402_p4)
}
  0x2b   :  { %s406_s3 = scalar_lea.vmem %s56_s23, 128  ;;  %p411_p6 = scmp.lt.s32.totalorder %s56_s23, %s56_s23 }
  0x2c   :  { %p407_p5 = scmp.ne.s32.totalorder %s56_s23, %s406_s3  ;;  %p412_p7 = scmp.lt.s32.totalorder %s406_s3, %s406_s3 }
  0x2e   :  { %p413_p8 = por %p412_p7, %p411_p6 }
  0x30   :  { %p414_p9 = pnand %p413_p8, %p407_p5 }
  0x32   :  { %417 = shalt.err (!%p414_p9)
}
  0x33   :  { %58 = dma.hbm_to_vmem [thread:$0]  %s695_s6, 128, %s56_s23, [#allocation6]  }
  0x34   :  { %s418_s17 = scalar_lea.hbm %s697_s8, 128 }
  0x35   :  { %p419_p10 = scmp.ne.s32.totalorder %s697_s8, %s418_s17  ;;  %p422_p11 = scmp.lt.u32.totalorder %s418_s17, %s697_s8 }
  0x37   :  { %p424_p12 = pnand %p422_p11, %p419_p10 }
  0x39   :  { %427 = shalt.err (!%p424_p12)
}
  0x3a   :  { %s428_s22 = scalar_lea.vmem %s68_s25, 128  ;;  %p433_p0 = scmp.lt.s32.totalorder %s68_s25, %s68_s25 }
  0x3b   :  { %p429_p13 = scmp.ne.s32.totalorder %s68_s25, %s428_s22  ;;  %p434_p1 = scmp.lt.s32.totalorder %s428_s22, %s428_s22 }
  0x3d   :  { %p435_p2 = por %p434_p1, %p433_p0 }
  0x3f   :  { %p436_p3 = pnand %p435_p2, %p429_p13 }
  0x41   :  { %439 = shalt.err (!%p436_p3)
}
  0x42   :  { %70 = dma.hbm_to_vmem [thread:$0]  %s697_s8, 128, %s68_s25, [#allocation9]  }
  0x43   :  { %462 = dma.done.wait [#allocation3], 128  }
  0x44   :  { %463 = vsyncadd [#allocation3], 4294967168 }
  0x45   :  { %464 = dma.done.wait [#allocation6], 256  }
  0x46   :  { %465 = vsyncadd [#allocation6], 4294967040 }
  0x47   :  { %466 = dma.done.wait [#allocation9], 128  }
  0x48   :  { %467 = vsyncadd [#allocation9], 4294967168  ;;  %v474_v0 = vmov 0   ;;  %v85_v1 = vld [vmem:[%s689_s0] sm:$0xff]  ;;  %v86_v2 = vlaneseq  ;;  %vm94_vm0 = vcmask 130048   ;;  %v167_v8 = vld [vmem:[#allocation7] sm:$0xff] }
  0x49   :  { %345 = vset.pattern.permute.xlu0 %v474_v0  ;;  %v92_v4 = vld [vmem:[%s690_s1] sm:$0xff]  ;;  %v122_v20 = vld [vmem:[#allocation2] sm:$0xff]  ;;  %v197_v21 = vld [vmem:[#allocation8] sm:$0xff]  ;;  %vm225_vm2 = vcmask 7168   ;;  %vm227_vm5 = vcmask 15360   ;;  %vm229_vm8 = vcmask 23552  }
  0x4a   :  { %89 = vperm.xlu0 %345, %v85_v1   ;;  %v87_v3 = vand.u32 127, %v86_v2  ;;  %v107_v7 = vld [vmem:[%s691_s2] sm:$0xff]  ;;  %vm231_vm9 = vcmask 31744   ;;  %vm233_vm11 = vcmask 39936   ;;  %vm235_vm14 = vcmask 48128  }
  0x4b   :  { %v182_v15 = vld [vmem:[%s696_s7] sm:$0xff] }
  0x4c   :  { %v212_v26 = vld [vmem:[%s698_s9] sm:$0xff]  ;;  %s475_s9 = smov [#allocation10]  }
  0x4d   :  { %v137_v31 = vld [vmem:[%s693_s4] sm:$0xff]  ;;  %s323_s12 = sshll.u32 %s475_s9, 4  ;;  %s324_s12 = int_to_ptr.vmem [resolvable:$true] %s323_s12 }
  0x4e   :  { %v152_v37 = vld [vmem:[#allocation5] sm:$0xff]  ;;  %s440_s13 = scalar_lea.vmem %s324_s12, 16  ;;  %s444_s3 = scalar_lea.vmem %s324_s12, 32 }
  0x4f   :  { %p441_p4 = scmp.ne.s32.totalorder %s324_s12, %s440_s13  ;;  %p445_p5 = scmp.lt.s32.totalorder %s324_s12, %s324_s12 }
  0x50   :  { %p446_p6 = scmp.lt.s32.totalorder %s444_s3, %s440_s13 }
  0x52   :  { %p447_p7 = por %p446_p6, %p445_p5 }
  0x54   :  { %p448_p8 = pnand %p447_p7, %p441_p4 }
  0xc9   :  { %v90_v5 = vpop.permute.xlu0 %89 }
  0xca   :  { %vm590_vm1 = vcmp.eq.s32.totalorder %v87_v3, %v90_v5 }
  0xcb   :  { %v98_v9 = vsel %vm590_vm1, -3.4028235e+38, %v92_v4  ;;  %v93_v10 = vsel %vm590_vm1, %v92_v4, -3.4028235e+38  ;;  %v108_v13 = vsel %vm590_vm1, %v107_v7, -3.4028235e+38 }
  0xcc   :  { %v99_v11 = vsel %vm94_vm0, %v98_v9, -inf  ;;  %v95_v12 = vsel %vm94_vm0, %v93_v10, -inf  ;;  %v168_v14 = vsel %vm590_vm1, %v167_v8, -3.4028235e+38  ;;  %v109_v16 = vsel %vm94_vm0, %v108_v13, -inf }
  0xcd   :  { %100 = vmax.xlane.f32.xlu1 %v99_v11  ;;  %96 = vmax.xlane.f32.xlu0 %v95_v12  ;;  %v169_v17 = vsel %vm94_vm0, %v168_v14, -inf  ;;  %v112_v18 = vsel %vm590_vm1, -3.4028235e+38, %v107_v7  ;;  %v183_v19 = vsel %vm590_vm1, %v182_v15, -3.4028235e+38 }
  0xce   :  { %v113_v22 = vsel %vm94_vm0, %v112_v18, -inf  ;;  %v184_v23 = vsel %vm94_vm0, %v183_v19, -inf  ;;  %v123_v24 = vsel %vm590_vm1, %v122_v20, -3.4028235e+38  ;;  %v198_v25 = vsel %vm590_vm1, %v197_v21, -3.4028235e+38 }
  0xcf   :  { %v124_v27 = vsel %vm94_vm0, %v123_v24, -inf  ;;  %v199_v28 = vsel %vm94_vm0, %v198_v25, -inf  ;;  %v127_v29 = vsel %vm590_vm1, -3.4028235e+38, %v122_v20  ;;  %v213_v30 = vsel %vm590_vm1, %v212_v26, -3.4028235e+38 }
  0xd0   :  { %v128_v32 = vsel %vm94_vm0, %v127_v29, -inf  ;;  %v214_v33 = vsel %vm94_vm0, %v213_v30, -inf  ;;  %v138_v34 = vsel %vm590_vm1, %v137_v31, -3.4028235e+38  ;;  %v142_v36 = vsel %vm590_vm1, -3.4028235e+38, %v137_v31 }
  0xd1   :  { %110 = vmax.xlane.f32.xlu1 %v109_v16  ;;  %170 = vmax.xlane.f32.xlu0 %v169_v17  ;;  %v139_v35 = vsel %vm94_vm0, %v138_v34, -inf  ;;  %v143_v38 = vsel %vm94_vm0, %v142_v36, -inf  ;;  %v153_v39 = vsel %vm590_vm1, %v152_v37, -3.4028235e+38  ;;  %v157_v41 = vsel %vm590_vm1, -3.4028235e+38, %v152_v37 }
  0xd2   :  { %v154_v40 = vsel %vm94_vm0, %v153_v39, -inf  ;;  %v158_v42 = vsel %vm94_vm0, %v157_v41, -inf  ;;  %v172_v43 = vsel %vm590_vm1, -3.4028235e+38, %v167_v8  ;;  %v187_v45 = vsel %vm590_vm1, -3.4028235e+38, %v182_v15 }
  0xd3   :  { %v173_v44 = vsel %vm94_vm0, %v172_v43, -inf  ;;  %v188_v46 = vsel %vm94_vm0, %v187_v45, -inf  ;;  %v202_v47 = vsel %vm590_vm1, -3.4028235e+38, %v197_v21  ;;  %v217_v49 = vsel %vm590_vm1, -3.4028235e+38, %v212_v26 }
  0xd4   :  { %v203_v48 = vsel %vm94_vm0, %v202_v47, -inf  ;;  %v218_v50 = vsel %vm94_vm0, %v217_v49, -inf  ;;  %vm237_vm0 = vcmask 56320   ;;  %vm239_vm1 = vcmask 64512  }
  0xd5   :  { %114 = vmax.xlane.f32.xlu1 %v113_v22  ;;  %185 = vmax.xlane.f32.xlu0 %v184_v23 }
  0xd9   :  { %125 = vmax.xlane.f32.xlu1 %v124_v27  ;;  %200 = vmax.xlane.f32.xlu0 %v199_v28 }
  0xdd   :  { %129 = vmax.xlane.f32.xlu1 %v128_v32  ;;  %215 = vmax.xlane.f32.xlu0 %v214_v33 }
  0xe1   :  { %140 = vmax.xlane.f32.xlu1 %v139_v35 }
  0xe5   :  { %144 = vmax.xlane.f32.xlu1 %v143_v38 }
  0xe9   :  { %155 = vmax.xlane.f32.xlu1 %v154_v40 }
  0xed   :  { %159 = vmax.xlane.f32.xlu1 %v158_v42 }
  0xf1   :  { %174 = vmax.xlane.f32.xlu1 %v173_v44 }
  0xf5   :  { %189 = vmax.xlane.f32.xlu1 %v188_v46 }
  0xf9   :  { %204 = vmax.xlane.f32.xlu1 %v203_v48 }
  0xfd   :  { %219 = vmax.xlane.f32.xlu1 %v218_v50 }
 0x15a   :  { %v101_v51 = vpop.xlane.xlu1 %100  ;;  %v97_v57 = vpop.xlane.xlu0 %96 }
 0x15b   :  { %v106_v63 = vmax.f32 %v97_v57, %v101_v51  ;;  %v103_v2 = vsub.f32 %v97_v57, %v101_v51  ;;  %vm102_vm3 = vcmp.gt.f32.partialorder %v97_v57, %v101_v51 }
 0x15d   :  { %v104_v12 = vmul.f32 0.5, %v103_v2 }
 0x15e   :  { %v111_v52 = vpop.xlane.xlu1 %110  ;;  %v171_v60 = vpop.xlane.xlu0 %170 }
 0x15f   :  { %v105_v24 = vsel %vm102_vm3, %v104_v12, 0.0 }
 0x162   :  { %v115_v53 = vpop.xlane.xlu1 %114  ;;  %v186_v6 = vpop.xlane.xlu0 %185 }
 0x163   :  { %v120_v61 = vmax.f32 %v111_v52, %v115_v53  ;;  %v117_v0 = vsub.f32 %v111_v52, %v115_v53  ;;  %vm116_vm4 = vcmp.gt.f32.partialorder %v111_v52, %v115_v53 }
 0x165   :  { %v121_v3 = vmax.f32 %v106_v63, %v120_v61  ;;  %v118_v9 = vmul.f32 0.5, %v117_v0 }
 0x166   :  { %v126_v54 = vpop.xlane.xlu1 %125  ;;  %v201_v25 = vpop.xlane.xlu0 %200 }
 0x167   :  { %v119_v20 = vsel %vm116_vm4, %v118_v9, 0.0 }
 0x168   :  { %v226_v29 = vsel %vm225_vm2, %v105_v24, %v119_v20 }
 0x16a   :  { %v130_v55 = vpop.xlane.xlu1 %129  ;;  %v216_v41 = vpop.xlane.xlu0 %215 }
 0x16b   :  { %v135_v1 = vmax.f32 %v126_v54, %v130_v55  ;;  %v132_v4 = vsub.f32 %v126_v54, %v130_v55  ;;  %vm131_vm6 = vcmp.gt.f32.partialorder %v126_v54, %v130_v55 }
 0x16d   :  { %v136_v10 = vmax.f32 %v121_v3, %v135_v1  ;;  %v133_v13 = vmul.f32 0.5, %v132_v4 }
 0x16e   :  { %v141_v56 = vpop.xlane.xlu1 %140 }
 0x16f   :  { %v134_v26 = vsel %vm131_vm6, %v133_v13, 0.0 }
 0x170   :  { %v228_v37 = vsel %vm227_vm5, %v226_v29, %v134_v26 }
 0x172   :  { %v145_v58 = vpop.xlane.xlu1 %144 }
 0x173   :  { %v150_v5 = vmax.f32 %v141_v56, %v145_v58  ;;  %v147_v7 = vsub.f32 %v141_v56, %v145_v58  ;;  %vm146_vm7 = vcmp.gt.f32.partialorder %v141_v56, %v145_v58 }
 0x175   :  { %v151_v14 = vmax.f32 %v136_v10, %v150_v5  ;;  %v148_v17 = vmul.f32 0.5, %v147_v7 }
 0x176   :  { %v156_v59 = vpop.xlane.xlu1 %155 }
 0x177   :  { %v149_v30 = vsel %vm146_vm7, %v148_v17, 0.0 }
 0x178   :  { %v230_v42 = vsel %vm229_vm8, %v228_v37, %v149_v30 }
 0x17a   :  { %v160_v62 = vpop.xlane.xlu1 %159 }
 0x17b   :  { %v165_v11 = vmax.f32 %v156_v59, %v160_v62  ;;  %v162_v15 = vsub.f32 %v156_v59, %v160_v62  ;;  %vm161_vm10 = vcmp.gt.f32.partialorder %v156_v59, %v160_v62 }
 0x17d   :  { %v166_v21 = vmax.f32 %v151_v14, %v165_v11  ;;  %v163_v27 = vmul.f32 0.5, %v162_v15 }
 0x17e   :  { %v175_v8 = vpop.xlane.xlu1 %174 }
 0x17f   :  { %v180_v16 = vmax.f32 %v171_v60, %v175_v8  ;;  %v177_v18 = vsub.f32 %v171_v60, %v175_v8  ;;  %v164_v38 = vsel %vm161_vm10, %v163_v27, 0.0  ;;  %vm176_vm12 = vcmp.gt.f32.partialorder %v171_v60, %v175_v8 }
 0x180   :  { %v232_v48 = vsel %vm231_vm9, %v230_v42, %v164_v38 }
 0x181   :  { %v181_v28 = vmax.f32 %v166_v21, %v180_v16  ;;  %v178_v31 = vmul.f32 0.5, %v177_v18 }
 0x182   :  { %v190_v19 = vpop.xlane.xlu1 %189 }
 0x183   :  { %v192_v22 = vsub.f32 %v186_v6, %v190_v19  ;;  %v195_v23 = vmax.f32 %v186_v6, %v190_v19  ;;  %v179_v43 = vsel %vm176_vm12, %v178_v31, 0.0  ;;  %vm191_vm13 = vcmp.gt.f32.partialorder %v186_v6, %v190_v19 }
 0x184   :  { %v234_v50 = vsel %vm233_vm11, %v232_v48, %v179_v43 }
 0x185   :  { %v193_v33 = vmul.f32 0.5, %v192_v22  ;;  %v196_v34 = vmax.f32 %v181_v28, %v195_v23 }
 0x186   :  { %v205_v32 = vpop.xlane.xlu1 %204 }
 0x187   :  { %v207_v35 = vsub.f32 %v201_v25, %v205_v32  ;;  %v210_v36 = vmax.f32 %v201_v25, %v205_v32  ;;  %v194_v45 = vsel %vm191_vm13, %v193_v33, 0.0  ;;  %vm206_vm15 = vcmp.gt.f32.partialorder %v201_v25, %v205_v32 }
 0x188   :  { %v236_v53 = vsel %vm235_vm14, %v234_v50, %v194_v45 }
 0x189   :  { %v208_v39 = vmul.f32 0.5, %v207_v35  ;;  %v211_v40 = vmax.f32 %v196_v34, %v210_v36 }
 0x18a   :  { %v220_v44 = vpop.xlane.xlu1 %219 }
 0x18b   :  { %v222_v46 = vsub.f32 %v216_v41, %v220_v44  ;;  %v306_v47 = vrot.slane %v211_v40, 4  ;;  %v209_v49 = vsel %vm206_vm15, %v208_v39, 0.0  ;;  %vm221_vm2 = vcmp.gt.f32.partialorder %v216_v41, %v220_v44 }
 0x18c   :  { %v238_v55 = vsel %vm237_vm0, %v236_v53, %v209_v49 }
 0x18d   :  { %v223_v51 = vmul.f32 0.5, %v222_v46  ;;  %v307_v52 = vmax.f32 %v211_v40, %v306_v47 }
 0x18f   :  { %v224_v54 = vsel %vm221_vm2, %v223_v51, 0.0  ;;  %v308_v56 = vrot.slane %v307_v52, 2 }
 0x190   :  { %v240_v57 = vsel %vm239_vm1, %v238_v55, %v224_v54 }
 0x191   :  { %241 = vxpose.xlu0.b32.start.end [1/1] (short) (narrow) %v240_v57, 16  ;;  %v309_v58 = vmax.f32 %v307_v52, %v308_v56 }
 0x193   :  { %v310_v59 = vrot.slane %v309_v58, 1 }
 0x195   :  { %v311_v60 = vmax.f32 %v309_v58, %v310_v59 }
 0x197   :  { %336 = vpush %v311_v60 }
 0x1c8   :  { %s337_s4 = spop %336 }
 0x1c9   :  { %v313_v61 = vstv %s337_s4 }
 0x1ca   :  { %314 = vst [vmem:[#allocation10] sm:$0x1] %v313_v61 }
 0x1cb   :  { %451 = shalt.err (!%p448_p8)
}
 0x1cc   :  { %s452_s15 = scalar_lea.hbm %s700_s11, 16 }
 0x1cd   :  { %p453_p9 = scmp.ne.s32.totalorder %s700_s11, %s452_s15  ;;  %p456_p10 = scmp.lt.u32.totalorder %s452_s15, %s700_s11 }
 0x1cf   :  { %p458_p11 = pnand %p456_p10, %p453_p9 }
 0x1d1   :  { %461 = shalt.err (!%p458_p11)
}
 0x1d2   :  { %326 = dma.vmem_to_hbm [thread:$0]  %s324_s12, 16, %s700_s11, [#allocation4]   ;;  %vm274_vm3 = vcmask 57344  }
 0x211   :  { %v257_v62 = vpop.trf.xlu0 }
 0x212   :  { %v273_v0 = vsel %vm239_vm1, %v257_v62, -inf }
 0x215   :  { %v258_v63 = vpop.trf.xlu0 }
 0x216   :  { %v275_v1 = vsel %vm274_vm3, %v258_v63, -inf }
 0x217   :  { %v276_v2 = vmax.f32 %v273_v0, %v275_v1 }
 0x219   :  { %v277_v3 = vrot.slane %v276_v2, 4 }
 0x21b   :  { %v278_v4 = vmax.f32 %v276_v2, %v277_v3 }
 0x21d   :  { %v279_v5 = vrot.slane %v278_v4, 2 }
 0x21f   :  { %v280_v6 = vmax.f32 %v278_v4, %v279_v5 }
 0x221   :  { %v281_v7 = vrot.slane %v280_v6, 1 }
 0x223   :  { %v282_v8 = vmax.f32 %v280_v6, %v281_v7 }
 0x225   :  { %v283_v9 = vsub.f32 %v257_v62, %v282_v8  ;;  %v284_v10 = vsub.f32 %v258_v63, %v282_v8 }
 0x227   :  { %v285_v11 = vmul.f32 1.442695, %v283_v9  ;;  %v287_v12 = vmul.f32 1.442695, %v284_v10 }
 0x229   :  { %346 = vpow2.f32 %v285_v11 }
 0x22a   :  { %348 = vpow2.f32 %v287_v12 }
 0x233   :  { %v347_v13 = vpop.eup %346 }
 0x234   :  { %v349_v14 = vpop.eup %348  ;;  %v289_v15 = vsel %vm239_vm1, %v347_v13, 0.0 }
 0x235   :  { %v290_v16 = vsel %vm274_vm3, %v349_v14, 0.0 }
 0x236   :  { %v291_v17 = vadd.f32 %v290_v16, %v289_v15 }
 0x238   :  { %v292_v18 = vrot.slane %v291_v17, 4 }
 0x23a   :  { %v293_v19 = vadd.f32 %v292_v18, %v291_v17 }
 0x23c   :  { %v294_v20 = vrot.slane %v293_v19, 2 }
 0x23e   :  { %v295_v21 = vadd.f32 %v294_v20, %v293_v19 }
 0x240   :  { %v296_v22 = vrot.slane %v295_v21, 1 }
 0x242   :  { %v297_v23 = vadd.f32 %v296_v22, %v295_v21 }
 0x244   :  { %350 = vrcp.f32 %v297_v23 }
 0x24e   :  { %v351_v24 = vpop.eup %350 }
 0x24f   :  { %v299_v25 = vmul.f32 %v351_v24, %v297_v23 }
 0x251   :  { %v300_v26 = vsub.f32 2.0, %v299_v25 }
 0x253   :  { %v301_v27 = vmul.f32 %v351_v24, %v300_v26 }
 0x255   :  { %v302_v28 = vmul.f32 %v347_v13, %v301_v27  ;;  %v303_v29 = vmul.f32 %v349_v14, %v301_v27 }
 0x257   :  { %304 = vst.msk [vmem:[%s699_s10] sm:$0xff] %vm239_vm1, %v302_v28 }
 0x258   :  { %305 = vst.msk [vmem:[%s699_s10 + $0x8] sm:$0x1] %vm274_vm3, %v303_v29 }
 0x259   :  { %468 = dma.done.wait [#allocation4], 16  }
 0x25a   :  { %469 = vsyncadd [#allocation4], 4294967280 }
 0x25b   :  { %332 = vsyncpa [#allocation3], 1 }
 0x25c   :  { %333 = vsyncpa [#allocation6], 1 }
 0x25d   :  { %334 = vsyncpa [#allocation9], 1 }
 0x25e   :  { %335 = vsyncpa [#allocation4], 1 }

</bundles_post_ra>
